<compile_context>
chip_gen: v7x
topology: tpu7x:2x2x1
jax: 0.10.0
libtpu: 0.0.40
codegen_flags: <defaults>
</compile_context>

<pallas_src>
import jax
import jax.numpy as jnp
from jax.experimental import pallas as pl
from jax.experimental.pallas import tpu as pltpu


def _round_up(x, m):
    return ((x + m - 1) // m) * m


# ---------------------------------------------------------------------------
# Path A kernel: W resident in VMEM, no reduction axis, no accumulator.
# ---------------------------------------------------------------------------
def _gnn_w_resident_kernel(x_ref, w_ref, o_ref):
    # One MXU matmul per row tile, written straight into the lane-dense
    # (tm, H) output block. f32 accumulation on the MXU path.
    o_ref[...] = jnp.dot(
        x_ref[...], w_ref[...], preferred_element_type=jnp.float32
    ).astype(o_ref.dtype)


# ---------------------------------------------------------------------------
# Path B kernel: large-W fallback, tiled reduction over D with f32 scratch.
# ---------------------------------------------------------------------------
def _gnn_tiled_kernel(x_ref, w_ref, o_ref, acc_ref):
    @pl.when(pl.program_id(2) == 0)
    def _():
        acc_ref[...] = jnp.zeros_like(acc_ref)

    acc_ref[...] += jnp.dot(
        x_ref[...], w_ref[...], preferred_element_type=jnp.float32
    )

    @pl.when(pl.program_id(2) == pl.num_programs(2) - 1)
    def _():
        o_ref[...] = acc_ref[...].astype(o_ref.dtype)


def gnn_forward(
    X,
    W,
    *,
    tm=512,
    tn=256,
    tk=256,
    w_resident_bytes=12 * 1024 * 1024,
    cast_to_bf16=False,
):
    """Pallas TPU equivalent of GNN.forward: returns X @ W.

    cast_to_bf16: optionally feed bf16 operands to the MXU (f32 accumulate);
    recommended on v6e/v7x when accuracy allows.
    """
    N, D = X.shape
    D2, H = W.shape
    assert D == D2, "inner dims must match"
    out_dtype = X.dtype

    if cast_to_bf16:
        X = X.astype(jnp.bfloat16)
        W = W.astype(jnp.bfloat16)

    w_bytes = D * H * jnp.dtype(W.dtype).itemsize

    if w_bytes <= w_resident_bytes:
        # ----------------- Path A: W fully resident in VMEM -----------------
        # Row tile: multiple of 8 sublanes; shrink for small node counts.
        tm_eff = min(tm, _round_up(N, 8))
        n_pad = _round_up(N, tm_eff)
        Xp = X if n_pad == N else jnp.pad(X, ((0, n_pad - N), (0, 0)))
        grid = (n_pad // tm_eff,)

        # Explicit VMEM budget with headroom (re-derived, safe on v7x 64 MiB).
        in_item = jnp.dtype(X.dtype).itemsize
        out_item = jnp.dtype(out_dtype).itemsize
        vmem_bytes = (
            2 * tm_eff * D * in_item      # double-buffered X tiles
            + 2 * tm_eff * H * out_item   # double-buffered output tiles
            + w_bytes                     # resident W
        )
        vmem_limit = min(max(int(vmem_bytes * 1.5), 4 << 20), 64 * 1024 * 1024)

        out_p = pl.pallas_call(
            _gnn_w_resident_kernel,
            out_shape=jax.ShapeDtypeStruct((n_pad, H), out_dtype),
            grid_spec=pltpu.PrefetchScalarGridSpec(
                num_scalar_prefetch=0,
                grid=grid,
                in_specs=[
                    # Streamed X row tiles, full-D wide.
                    pl.BlockSpec((tm_eff, D), lambda i: (i, 0)),
                    # Full-array block: DMA'd once, stays resident across i.
                    pl.BlockSpec((D, H), lambda i: (0, 0)),
                ],
                # Lane-dense, full-H-wide output block.
                out_specs=pl.BlockSpec((tm_eff, H), lambda i: (i, 0)),
            ),
            compiler_params=pltpu.CompilerParams(
                dimension_semantics=("parallel",),  # shards across TCs on v7x
                vmem_limit_bytes=vmem_limit,
            ),
        )(Xp, W)
        return out_p[:N] if n_pad != N else out_p

    # -------- Path B: W too large for residency -> tiled reduction ---------
    tm_eff = min(tm, _round_up(N, 8))
    tn_eff = min(tn, _round_up(H, 128))
    tk_eff = min(tk, _round_up(D, 128))
    n_pad = _round_up(N, tm_eff)
    h_pad = _round_up(H, tn_eff)
    d_pad = _round_up(D, tk_eff)
    Xp = X if (n_pad == N and d_pad == D) else jnp.pad(
        X, ((0, n_pad - N), (0, d_pad - D)))
    Wp = W if (d_pad == D and h_pad == H) else jnp.pad(
        W, ((0, d_pad - D), (0, h_pad - H)))

    out_p = pl.pallas_call(
        _gnn_tiled_kernel,
        out_shape=jax.ShapeDtypeStruct((n_pad, h_pad), out_dtype),
        grid_spec=pltpu.PrefetchScalarGridSpec(
            num_scalar_prefetch=0,
            grid=(n_pad // tm_eff, h_pad // tn_eff, d_pad // tk_eff),
            in_specs=[
                pl.BlockSpec((tm_eff, tk_eff), lambda i, j, k: (i, k)),
                pl.BlockSpec((tk_eff, tn_eff), lambda i, j, k: (k, j)),
            ],
            out_specs=pl.BlockSpec((tm_eff, tn_eff), lambda i, j, k: (i, j)),
            scratch_shapes=[pltpu.VMEM((tm_eff, tn_eff), jnp.float32)],
        ),
        compiler_params=pltpu.CompilerParams(
            dimension_semantics=("parallel", "parallel", "arbitrary"),
        ),
    )(Xp, Wp)
    if n_pad != N or h_pad != H:
        out_p = out_p[:N, :H]
    return out_p


# TODO(synk): GNN.decode (edge-index gather + rowwise dot) is a data-dependent
# gather; not part of forward(), left unimplemented here.


if __name__ == "__main__":
    key = jax.random.PRNGKey(0)
    kx, kw = jax.random.split(key)

    # Small, forward-consistent shapes; N=300 deliberately exercises the
    # padding path for arbitrary node counts.
    N, D, H = 300, 128, 256
    X = jax.random.normal(kx, (N, D), dtype=jnp.float32)
    W = jax.random.normal(kw, (D, H), dtype=jnp.float32) * 0.02

    ref = X @ W

    # Path A: W resident in VMEM (default for typical GNN layer sizes).
    out_a = gnn_forward(X, W)
    jax.block_until_ready(out_a)
    assert out_a.shape == (N, H)
    assert jnp.allclose(out_a, ref, atol=1e-4, rtol=1e-4)

    # Path B: force the tiled-reduction fallback to validate it as well.
    out_b = gnn_forward(X, W, w_resident_bytes=0)
    jax.block_until_ready(out_b)
    assert out_b.shape == (N, H)
    assert jnp.allclose(out_b, ref, atol=1e-4, rtol=1e-4)

    print("KERNEL_OK")
</pallas_src>

<mosaic_0001>
module attributes {stable_mosaic.version = 11 : i64} {
  func.func @_gnn_w_resident_kernel(%arg0: i32, %arg1: memref<304x128xf32, #tpu.memory_space<vmem>>, %arg2: memref<128x256xf32, #tpu.memory_space<vmem>>, %arg3: memref<304x256xf32, #tpu.memory_space<vmem>>) attributes {dimension_semantics = [#tpu.dimension_semantics<parallel>], iteration_bounds = array<i64: 1>, scalar_prefetch = 0 : i64, scratch_operands = 0 : i64, tpu.core_type = #tpu.core_type<tc>, window_params = [{transform_indices = @transform_0, window_bounds = array<i64: 304, 128>}, {pipeline_mode = #tpu.pipeline_mode<synchronous>, transform_indices = @transform_1, window_bounds = array<i64: 128, 256>}, {transform_indices = @transform_2, window_bounds = array<i64: 304, 256>}]} {
    %c0 = arith.constant 0 : index
    %c0_0 = arith.constant 0 : index
    %0 = vector.load %arg1[%c0, %c0_0] : memref<304x128xf32, #tpu.memory_space<vmem>>, vector<304x128xf32>
    %c0_1 = arith.constant 0 : index
    %c0_2 = arith.constant 0 : index
    %1 = vector.load %arg2[%c0_1, %c0_2] : memref<128x256xf32, #tpu.memory_space<vmem>>, vector<128x256xf32>
    %cst = arith.constant dense<0.000000e+00> : vector<304x256xf32>
    %2 = tpu.matmul %0, %1, %cst {dimension_numbers = #tpu.dot_dimension_numbers<[1], [0], [0], [1], [0, 0, 1, 1], [], []>} : vector<304x128xf32>, vector<128x256xf32>, vector<304x256xf32> -> vector<304x256xf32>
    %c0_3 = arith.constant 0 : index
    %c0_4 = arith.constant 0 : index
    %3 = vector.load %arg3[%c0_3, %c0_4] : memref<304x256xf32, #tpu.memory_space<vmem>>, vector<304x256xf32>
    tpu.vector_store %arg3[%c0_3, %c0_4], %2 {strides = array<i32>} : memref<304x256xf32, #tpu.memory_space<vmem>>, vector<304x256xf32>,
    return
  }
  func.func @transform_0(%arg0: i32) -> (i32, i32) {
    %c0_i32 = arith.constant 0 : i32
    %c0_i32_0 = arith.constant 0 : i32
    return %arg0, %c0_i32 : i32, i32
  }
  func.func @transform_1(%arg0: i32) -> (i32, i32) {
    %c0_i32 = arith.constant 0 : i32
    %c0_i32_0 = arith.constant 0 : i32
    %c0_i32_1 = arith.constant 0 : i32
    return %c0_i32, %c0_i32_0 : i32, i32
  }
  func.func @transform_2(%arg0: i32) -> (i32, i32) {
    %c0_i32 = arith.constant 0 : i32
    %c0_i32_0 = arith.constant 0 : i32
    return %arg0, %c0_i32 : i32, i32
  }
}

</mosaic_0001>

<bundles_post_ra>
// kernel: tpu_custom_call.1
= control target key start
LH: loop header
LB: loop body
LE: loop exit
PB: predicated region body
PF: predicated region fallthrough
CT: control target
= control target key end

     0   :  { %7 = vsyncpa [#allocation3], 0  ;;  %s728_s0 = inlined_call_operand.hbm [shape: f32[304,128], index: 0, kind: input, shape index: {}]   ;;  %s729_s1 = inlined_call_operand.hbm [shape: f32[128,256], index: 1, kind: input, shape index: {}]   ;;  %s730_s2 = inlined_call_operand.hbm [shape: f32[304,256], index: 2, kind: output, shape index: {}]  }
   0x1   :  { %8 = vsyncpa [#allocation6], 0 }
   0x2   :  { %9 = vsyncpa [#allocation4], 0  ;;  %s625_s9 = smov [#allocation2]   ;;  %s553_s13 = scalar_lea.hbm %s728_s0, 4864 }
   0x3   :  { %s15_s10 = sshll.u32 %s625_s9, 4  ;;  %p554_p0 = scmp.ne.s32.totalorder %s728_s0, %s553_s13  ;;  %s16_s10 = int_to_ptr.vmem [resolvable:$true] %s15_s10 }
   0x4   :  { %p557_p1 = scmp.lt.u32.totalorder %s553_s13, %s728_s0 }
   0x6   :  { %p559_p2 = pnand %p557_p1, %p554_p0 }
   0x8   :  { %562 = shalt.err (!%p559_p2)
}
   0x9   :  { %s563_s18 = scalar_lea.vmem %s16_s10, 4864  ;;  %p568_p4 = scmp.lt.s32.totalorder %s16_s10, %s16_s10 }
   0xa   :  { %p564_p3 = scmp.ne.s32.totalorder %s16_s10, %s563_s18  ;;  %p569_p5 = scmp.lt.s32.totalorder %s563_s18, %s563_s18 }
   0xc   :  { %p570_p6 = por %p569_p5, %p568_p4 }
   0xe   :  { %p571_p7 = pnand %p570_p6, %p564_p3 }
  0x10   :  { %574 = shalt.err (!%p571_p7)
}
  0x11   :  { %s626_s19 = smov 128   ;;  %s627_s20 = smov 8  }
  0x12   :  { %21 = dma.hbm_to_vmem [thread:$0]  %s728_s0, 4864, %s16_s10, [#allocation3], %s626_s19, %s626_s19, %s627_s20  }
  0x13   :  { %s628_s23 = smov [#allocation5]   ;;  %s575_s27 = scalar_lea.hbm %s729_s1, 4096 }
  0x14   :  { %s27_s24 = sshll.u32 %s628_s23, 4  ;;  %p576_p8 = scmp.ne.s32.totalorder %s729_s1, %s575_s27  ;;  %s28_s24 = int_to_ptr.vmem [resolvable:$true] %s27_s24 }
  0x15   :  { %p579_p9 = scmp.lt.u32.totalorder %s575_s27, %s729_s1 }
  0x17   :  { %p581_p10 = pnand %p579_p9, %p576_p8 }
  0x19   :  { %584 = shalt.err (!%p581_p10)
}
  0x1a   :  { %s585_s4 = scalar_lea.vmem %s28_s24, 4096  ;;  %p590_p12 = scmp.lt.s32.totalorder %s28_s24, %s28_s24 }
  0x1b   :  { %p586_p11 = scmp.ne.s32.totalorder %s28_s24, %s585_s4  ;;  %p591_p13 = scmp.lt.s32.totalorder %s585_s4, %s585_s4 }
  0x1d   :  { %p592_p0 = por %p591_p13, %p590_p12 }
  0x1f   :  { %p593_p1 = pnand %p592_p0, %p586_p11 }
  0x21   :  { %596 = shalt.err (!%p593_p1)
}
  0x22   :  { %s629_s0 = smov 256   ;;  %s630_s5 = smov 16  }
  0x23   :  { %33 = dma.hbm_to_vmem [thread:$0]  %s729_s1, 4096, %s28_s24, [#allocation6], %s629_s0, %s629_s0, %s630_s5  }
  0x24   :  { %619 = dma.done.wait [#allocation3], 4864  }
  0x25   :  { %620 = vsyncadd [#allocation3], 4294962432 }
  0x26   :  { %621 = dma.done.wait [#allocation6], 4096  }
  0x27   :  { %622 = vsyncadd [#allocation6], 4294963200  ;;  %v631_v0 = vmov 0.0   ;;  %v79_v1 = vld [vmem:[#allocation5 + $0x8] sm:$0xff]  ;;  %v81_v2 = vld [vmem:[#allocation5 + $0x18] sm:$0xff]  ;;  %s632_s1 = smov [#allocation7]  }
  0x28   :  { %174 = vmatprep.mubr.f32.mxu0 %v631_v0  ;;  %288 = vmatprep.mubr.f32.mxu1 %v631_v0  ;;  %v78_v3 = vld [vmem:[#allocation5] sm:$0xff]  ;;  %v497_v4 = vpack.c.bf16 %v81_v2, %v79_v1  ;;  %v80_v5 = vld [vmem:[#allocation5 + $0x10] sm:$0xff]  ;;  %v83_v6 = vld [vmem:[#allocation5 + $0x28] sm:$0xff]  ;;  %s484_s8 = sshll.u32 %s632_s1, 4  ;;  %s485_s8 = int_to_ptr.vmem [resolvable:$true] %s484_s8 }
  0x29   :  { %v85_v7 = vld [vmem:[#allocation5 + $0x38] sm:$0xff]  ;;  %v499_v8 = vpack.c.bf16 %v80_v5, %v78_v3  ;;  %v82_v10 = vld [vmem:[#allocation5 + $0x20] sm:$0xff]  ;;  %v84_v11 = vld [vmem:[#allocation5 + $0x30] sm:$0xff]  ;;  %s597_s9 = scalar_lea.vmem %s485_s8, 9728  ;;  %p602_p3 = scmp.lt.s32.totalorder %s485_s8, %s485_s8 }
  0x2a   :  { %v501_v9 = vpack.c.bf16 %v85_v7, %v83_v6  ;;  %v87_v12 = vld [vmem:[#allocation5 + $0x48] sm:$0xff]  ;;  %498 = vmatprep.subr.bf16.mxu0 %v497_v4  ;;  %529 = vmatprep.subr.bf16.mxu1 %v497_v4  ;;  %v89_v13 = vld [vmem:[#allocation5 + $0x58] sm:$0xff]  ;;  %v503_v14 = vpack.c.bf16 %v84_v11, %v82_v10  ;;  %v86_v16 = vld [vmem:[#allocation5 + $0x40] sm:$0xff]  ;;  %p598_p2 = scmp.ne.s32.totalorder %s485_s8, %s597_s9  ;;  %p603_p4 = scmp.lt.s32.totalorder %s597_s9, %s597_s9 }
  0x2b   :  { %500 = vmatpush1.bf16.msra.mxu0 %v499_v8  ;;  %537 = vmatpush1.bf16.msra.mxu1 %v499_v8  ;;  %v505_v15 = vpack.c.bf16 %v89_v13, %v87_v12  ;;  %v88_v17 = vld [vmem:[#allocation5 + $0x50] sm:$0xff]  ;;  %v91_v18 = vld [vmem:[#allocation5 + $0x68] sm:$0xff]  ;;  %v93_v19 = vld [vmem:[#allocation5 + $0x78] sm:$0xff] }
  0x2c   :  { %502 = vmatprep.subr.bf16.mxu0 %v501_v9  ;;  %530 = vmatprep.subr.bf16.mxu1 %v501_v9  ;;  %v507_v20 = vpack.c.bf16 %v88_v17, %v86_v16  ;;  %v509_v21 = vpack.c.bf16 %v93_v19, %v91_v18  ;;  %v90_v22 = vld [vmem:[#allocation5 + $0x60] sm:$0xff]  ;;  %v92_v23 = vld [vmem:[#allocation5 + $0x70] sm:$0xff]  ;;  %v95_v24 = vld [vmem:[#allocation5 + $0x88] sm:$0xff]  ;;  %p604_p5 = por %p603_p4, %p602_p3 }
  0x2d   :  { %v97_v25 = vld [vmem:[#allocation5 + $0x98] sm:$0xff]  ;;  %v511_v26 = vpack.c.bf16 %v92_v23, %v90_v22  ;;  %v94_v28 = vld [vmem:[#allocation5 + $0x80] sm:$0xff]  ;;  %v96_v29 = vld [vmem:[#allocation5 + $0x90] sm:$0xff] }
  0x2e   :  { %v513_v27 = vpack.c.bf16 %v97_v25, %v95_v24  ;;  %v99_v30 = vld [vmem:[#allocation5 + $0xa8] sm:$0xff]  ;;  %v101_v31 = vld [vmem:[#allocation5 + $0xb8] sm:$0xff]  ;;  %v515_v32 = vpack.c.bf16 %v96_v29, %v94_v28  ;;  %v98_v34 = vld [vmem:[#allocation5 + $0xa0] sm:$0xff]  ;;  %p605_p6 = pnand %p604_p5, %p598_p2 }
  0x2f   :  { %504 = vmatpush1.bf16.msra.mxu0 %v503_v14  ;;  %538 = vmatpush1.bf16.msra.mxu1 %v503_v14  ;;  %v517_v33 = vpack.c.bf16 %v101_v31, %v99_v30  ;;  %v100_v35 = vld [vmem:[#allocation5 + $0xb0] sm:$0xff]  ;;  %v103_v36 = vld [vmem:[#allocation5 + $0xc8] sm:$0xff]  ;;  %v105_v37 = vld [vmem:[#allocation5 + $0xd8] sm:$0xff] }
  0x30   :  { %506 = vmatprep.subr.bf16.mxu0 %v505_v15  ;;  %531 = vmatprep.subr.bf16.mxu1 %v505_v15  ;;  %v519_v38 = vpack.c.bf16 %v100_v35, %v98_v34  ;;  %v521_v39 = vpack.c.bf16 %v105_v37, %v103_v36  ;;  %v102_v40 = vld [vmem:[#allocation5 + $0xc0] sm:$0xff]  ;;  %v104_v41 = vld [vmem:[#allocation5 + $0xd0] sm:$0xff]  ;;  %v107_v42 = vld [vmem:[#allocation5 + $0xe8] sm:$0xff] }
  0x31   :  { %v109_v43 = vld [vmem:[#allocation5 + $0xf8] sm:$0xff]  ;;  %v523_v44 = vpack.c.bf16 %v104_v41, %v102_v40  ;;  %v106_v46 = vld [vmem:[#allocation5 + $0xe0] sm:$0xff]  ;;  %v108_v47 = vld [vmem:[#allocation5 + $0xf0] sm:$0xff] }
  0x32   :  { %v525_v45 = vpack.c.bf16 %v109_v43, %v107_v42  ;;  %v527_v48 = vpack.c.bf16 %v108_v47, %v106_v46  ;;  %v40_v49 = vld [vmem:[#allocation2] sm:$0xff]  ;;  %v59_v50 = vld [vmem:[#allocation2 + $0x98] sm:$0xff]  ;;  %v41_v51 = vld [vmem:[#allocation2 + $0x8] sm:$0xff] }
  0x33   :  { %508 = vmatpush1.bf16.msra.mxu0 %v507_v20  ;;  %539 = vmatpush1.bf16.msra.mxu1 %v507_v20  ;;  %v60_v52 = vld [vmem:[#allocation2 + $0xa0] sm:$0xff]  ;;  %v42_v53 = vld [vmem:[#allocation2 + $0x10] sm:$0xff]  ;;  %v61_v54 = vld [vmem:[#allocation2 + $0xa8] sm:$0xff] }
  0x34   :  { %510 = vmatprep.subr.bf16.mxu0 %v509_v21  ;;  %532 = vmatprep.subr.bf16.mxu1 %v509_v21  ;;  %v43_v55 = vld [vmem:[#allocation2 + $0x18] sm:$0xff]  ;;  %v62_v56 = vld [vmem:[#allocation2 + $0xb0] sm:$0xff]  ;;  %v44_v57 = vld [vmem:[#allocation2 + $0x20] sm:$0xff] }
  0x35   :  { %v63_v58 = vld [vmem:[#allocation2 + $0xb8] sm:$0xff]  ;;  %v45_v59 = vld [vmem:[#allocation2 + $0x28] sm:$0xff]  ;;  %v64_v60 = vld [vmem:[#allocation2 + $0xc0] sm:$0xff] }
  0x36   :  { %v46_v61 = vld [vmem:[#allocation2 + $0x30] sm:$0xff]  ;;  %v65_v62 = vld [vmem:[#allocation2 + $0xc8] sm:$0xff]  ;;  %v47_v63 = vld [vmem:[#allocation2 + $0x38] sm:$0xff] }
  0x37   :  { %512 = vmatpush1.bf16.msra.mxu0 %v511_v26  ;;  %540 = vmatpush1.bf16.msra.mxu1 %v511_v26  ;;  %v66_v1 = vld [vmem:[#allocation2 + $0xd0] sm:$0xff]  ;;  %v48_v2 = vld [vmem:[#allocation2 + $0x40] sm:$0xff]  ;;  %v67_v3 = vld [vmem:[#allocation2 + $0xd8] sm:$0xff] }
  0x38   :  { %514 = vmatprep.subr.bf16.mxu0 %v513_v27  ;;  %533 = vmatprep.subr.bf16.mxu1 %v513_v27  ;;  %v49_v4 = vld [vmem:[#allocation2 + $0x48] sm:$0xff]  ;;  %v68_v5 = vld [vmem:[#allocation2 + $0xe0] sm:$0xff]  ;;  %v50_v6 = vld [vmem:[#allocation2 + $0x50] sm:$0xff] }
  0x39   :  { %v69_v7 = vld [vmem:[#allocation2 + $0xe8] sm:$0xff]  ;;  %v51_v8 = vld [vmem:[#allocation2 + $0x58] sm:$0xff]  ;;  %v70_v9 = vld [vmem:[#allocation2 + $0xf0] sm:$0xff] }
  0x3a   :  { %v52_v10 = vld [vmem:[#allocation2 + $0x60] sm:$0xff]  ;;  %v71_v11 = vld [vmem:[#allocation2 + $0xf8] sm:$0xff]  ;;  %v53_v12 = vld [vmem:[#allocation2 + $0x68] sm:$0xff] }
  0x3b   :  { %516 = vmatpush1.bf16.msra.mxu0 %v515_v32  ;;  %541 = vmatpush1.bf16.msra.mxu1 %v515_v32  ;;  %v72_v13 = vld [vmem:[#allocation2 + $0x100] sm:$0xff]  ;;  %v54_v14 = vld [vmem:[#allocation2 + $0x70] sm:$0xff]  ;;  %v73_v15 = vld [vmem:[#allocation2 + $0x108] sm:$0xff] }
  0x3c   :  { %518 = vmatprep.subr.bf16.mxu0 %v517_v33  ;;  %534 = vmatprep.subr.bf16.mxu1 %v517_v33  ;;  %v55_v16 = vld [vmem:[#allocation2 + $0x78] sm:$0xff]  ;;  %v74_v17 = vld [vmem:[#allocation2 + $0x110] sm:$0xff]  ;;  %v56_v18 = vld [vmem:[#allocation2 + $0x80] sm:$0xff] }
  0x3d   :  { %v75_v19 = vld [vmem:[#allocation2 + $0x118] sm:$0xff]  ;;  %v57_v20 = vld [vmem:[#allocation2 + $0x88] sm:$0xff]  ;;  %v76_v21 = vld [vmem:[#allocation2 + $0x120] sm:$0xff] }
  0x3e   :  { %v58_v22 = vld [vmem:[#allocation2 + $0x90] sm:$0xff]  ;;  %v77_v23 = vld [vmem:[#allocation2 + $0x128] sm:$0xff] }
  0x3f   :  { %520 = vmatpush1.bf16.msra.mxu0 %v519_v38  ;;  %542 = vmatpush1.bf16.msra.mxu1 %v519_v38 }
  0x40   :  { %522 = vmatprep.subr.bf16.mxu0 %v521_v39  ;;  %535 = vmatprep.subr.bf16.mxu1 %v521_v39 }
  0x43   :  { %524 = vmatpush1.bf16.msra.mxu0 %v523_v44  ;;  %543 = vmatpush1.bf16.msra.mxu1 %v523_v44 }
  0x44   :  { %526 = vmatprep.subr.bf16.mxu0 %v525_v45  ;;  %536 = vmatprep.subr.bf16.mxu1 %v525_v45 }
  0x47   :  { %528 = vmatpush1.bf16.msra.mxu0 %v527_v48  ;;  %544 = vmatpush1.bf16.msra.mxu1 %v527_v48 }
  0x4a   :  { %175 = vmatmul.mubr.f32.vlgmr.msra.gmra.mrb[0].mxu0 %v40_v49  ;;  %289 = vmatmul.mubr.f32.vlgmr.msra.gmra.mrb[0].mxu1 %v59_v50 }
  0x4b   :  { %180 = vmatprep.mubr.f32.mxu0 %v631_v0  ;;  %294 = vmatprep.mubr.f32.mxu1 %v631_v0 }
  0x4e   :  { %181 = vmatmul.mubr.f32.gmra.mrb[2].mxu0 %v41_v51  ;;  %295 = vmatmul.mubr.f32.gmra.mrb[2].mxu1 %v60_v52 }
  0x4f   :  { %186 = vmatprep.mubr.f32.mxu0 %v631_v0  ;;  %300 = vmatprep.mubr.f32.mxu1 %v631_v0 }
  0x52   :  { %187 = vmatmul.mubr.f32.gmra.mrb[4].mxu0 %v42_v53  ;;  %301 = vmatmul.mubr.f32.gmra.mrb[4].mxu1 %v61_v54 }
  0x53   :  { %192 = vmatprep.mubr.f32.mxu0 %v631_v0  ;;  %306 = vmatprep.mubr.f32.mxu1 %v631_v0 }
  0x56   :  { %193 = vmatmul.mubr.f32.gmra.mrb[6].mxu0 %v43_v55  ;;  %307 = vmatmul.mubr.f32.gmra.mrb[6].mxu1 %v62_v56 }
  0x57   :  { %198 = vmatprep.mubr.f32.mxu0 %v631_v0  ;;  %312 = vmatprep.mubr.f32.mxu1 %v631_v0 }
  0x5a   :  { %199 = vmatmul.mubr.f32.gmra.mrb[8].mxu0 %v44_v57  ;;  %313 = vmatmul.mubr.f32.gmra.mrb[8].mxu1 %v63_v58 }
  0x5b   :  { %204 = vmatprep.mubr.f32.mxu0 %v631_v0  ;;  %318 = vmatprep.mubr.f32.mxu1 %v631_v0 }
  0x5e   :  { %205 = vmatmul.mubr.f32.gmra.mrb[10].mxu0 %v45_v59  ;;  %319 = vmatmul.mubr.f32.gmra.mrb[10].mxu1 %v64_v60 }
  0x5f   :  { %210 = vmatprep.mubr.f32.mxu0 %v631_v0  ;;  %324 = vmatprep.mubr.f32.mxu1 %v631_v0 }
  0x62   :  { %211 = vmatmul.mubr.f32.gmra.mrb[12].mxu0 %v46_v61  ;;  %325 = vmatmul.mubr.f32.gmra.mrb[12].mxu1 %v65_v62 }
  0x63   :  { %216 = vmatprep.mubr.f32.mxu0 %v631_v0  ;;  %330 = vmatprep.mubr.f32.mxu1 %v631_v0 }
  0x66   :  { %217 = vmatmul.mubr.f32.gmra.mrb[14].mxu0 %v47_v63  ;;  %331 = vmatmul.mubr.f32.gmra.mrb[14].mxu1 %v66_v1 }
  0x67   :  { %222 = vmatprep.mubr.f32.mxu0 %v631_v0  ;;  %336 = vmatprep.mubr.f32.mxu1 %v631_v0 }
  0x6a   :  { %223 = vmatmul.mubr.f32.gmra.mrb[16].mxu0 %v48_v2  ;;  %337 = vmatmul.mubr.f32.gmra.mrb[16].mxu1 %v67_v3 }
  0x6b   :  { %228 = vmatprep.mubr.f32.mxu0 %v631_v0  ;;  %342 = vmatprep.mubr.f32.mxu1 %v631_v0 }
  0x6e   :  { %229 = vmatmul.mubr.f32.gmra.mrb[18].mxu0 %v49_v4  ;;  %343 = vmatmul.mubr.f32.gmra.mrb[18].mxu1 %v68_v5 }
  0x6f   :  { %234 = vmatprep.mubr.f32.mxu0 %v631_v0  ;;  %348 = vmatprep.mubr.f32.mxu1 %v631_v0 }
  0x72   :  { %235 = vmatmul.mubr.f32.gmra.mrb[20].mxu0 %v50_v6  ;;  %349 = vmatmul.mubr.f32.gmra.mrb[20].mxu1 %v69_v7 }
  0x73   :  { %240 = vmatprep.mubr.f32.mxu0 %v631_v0  ;;  %354 = vmatprep.mubr.f32.mxu1 %v631_v0 }
  0x76   :  { %241 = vmatmul.mubr.f32.gmra.mrb[22].mxu0 %v51_v8  ;;  %355 = vmatmul.mubr.f32.gmra.mrb[22].mxu1 %v70_v9 }
  0x77   :  { %246 = vmatprep.mubr.f32.mxu0 %v631_v0  ;;  %360 = vmatprep.mubr.f32.mxu1 %v631_v0 }
  0x7a   :  { %247 = vmatmul.mubr.f32.gmra.mrb[24].mxu0 %v52_v10  ;;  %361 = vmatmul.mubr.f32.gmra.mrb[24].mxu1 %v71_v11 }
  0x7b   :  { %252 = vmatprep.mubr.f32.mxu0 %v631_v0  ;;  %366 = vmatprep.mubr.f32.mxu1 %v631_v0 }
  0x7e   :  { %253 = vmatmul.mubr.f32.gmra.mrb[26].mxu0 %v53_v12  ;;  %367 = vmatmul.mubr.f32.gmra.mrb[26].mxu1 %v72_v13 }
  0x7f   :  { %258 = vmatprep.mubr.f32.mxu0 %v631_v0  ;;  %372 = vmatprep.mubr.f32.mxu1 %v631_v0 }
  0x82   :  { %259 = vmatmul.mubr.f32.gmra.mrb[28].mxu0 %v54_v14  ;;  %373 = vmatmul.mubr.f32.gmra.mrb[28].mxu1 %v73_v15 }
  0x83   :  { %264 = vmatprep.mubr.f32.mxu0 %v631_v0  ;;  %378 = vmatprep.mubr.f32.mxu1 %v631_v0 }
  0x86   :  { %265 = vmatmul.mubr.f32.gmra.mrb[30].mxu0 %v55_v16  ;;  %379 = vmatmul.mubr.f32.gmra.mrb[30].mxu1 %v74_v17 }
  0x87   :  { %270 = vmatprep.mubr.f32.mxu0 %v631_v0  ;;  %384 = vmatprep.mubr.f32.mxu1 %v631_v0 }
  0x8a   :  { %271 = vmatmul.mubr.f32.gmra.mrb[32].mxu0 %v56_v18  ;;  %385 = vmatmul.mubr.f32.gmra.mrb[32].mxu1 %v75_v19 }
  0x8b   :  { %276 = vmatprep.mubr.f32.mxu0 %v631_v0  ;;  %390 = vmatprep.mubr.f32.mxu1 %v631_v0 }
  0x8e   :  { %277 = vmatmul.mubr.f32.gmra.mrb[34].mxu0 %v57_v20  ;;  %391 = vmatmul.mubr.f32.gmra.mrb[34].mxu1 %v76_v21 }
  0x8f   :  { %282 = vmatprep.mubr.f32.mxu0 %v631_v0  ;;  %396 = vmatprep.mubr.f32.mxu1 %v631_v0 }
  0x92   :  { %283 = vmatmul.mubr.f32.gmra.mrb[36].mxu0 %v58_v22  ;;  %397 = vmatmul.mubr.f32.gmra.mrb[36].mxu1 %v77_v23 }
 0x11d   :  { %v176_v24 = vpop.f32.mrb[0].mxu0  ;;  %v290_v25 = vpop.f32.mrb[0].mxu1 }
 0x11e   :  { %403 = vst [vmem:[#allocation7] sm:$0xff] %v176_v24  ;;  %441 = vst [vmem:[#allocation7 + $0x130] sm:$0xff] %v290_v25  ;;  %v178_v26 = vpop.f32.mrb[1].mxu0  ;;  %v292_v27 = vpop.f32.mrb[1].mxu1 }
 0x11f   :  { %404 = vst [vmem:[#allocation7 + $0x8] sm:$0xff] %v178_v26  ;;  %442 = vst [vmem:[#allocation7 + $0x138] sm:$0xff] %v292_v27 }
 0x121   :  { %v182_v28 = vpop.f32.mrb[2].mxu0  ;;  %v296_v29 = vpop.f32.mrb[2].mxu1 }
 0x122   :  { %405 = vst [vmem:[#allocation7 + $0x10] sm:$0xff] %v182_v28  ;;  %443 = vst [vmem:[#allocation7 + $0x140] sm:$0xff] %v296_v29  ;;  %v184_v30 = vpop.f32.mrb[3].mxu0  ;;  %v298_v31 = vpop.f32.mrb[3].mxu1 }
 0x123   :  { %406 = vst [vmem:[#allocation7 + $0x18] sm:$0xff] %v184_v30  ;;  %444 = vst [vmem:[#allocation7 + $0x148] sm:$0xff] %v298_v31 }
 0x125   :  { %v188_v0 = vpop.f32.mrb[4].mxu0  ;;  %v302_v32 = vpop.f32.mrb[4].mxu1 }
 0x126   :  { %407 = vst [vmem:[#allocation7 + $0x20] sm:$0xff] %v188_v0  ;;  %445 = vst [vmem:[#allocation7 + $0x150] sm:$0xff] %v302_v32  ;;  %v190_v33 = vpop.f32.mrb[5].mxu0  ;;  %v304_v34 = vpop.f32.mrb[5].mxu1 }
 0x127   :  { %408 = vst [vmem:[#allocation7 + $0x28] sm:$0xff] %v190_v33  ;;  %446 = vst [vmem:[#allocation7 + $0x158] sm:$0xff] %v304_v34 }
 0x129   :  { %v194_v35 = vpop.f32.mrb[6].mxu0  ;;  %v308_v36 = vpop.f32.mrb[6].mxu1 }
 0x12a   :  { %409 = vst [vmem:[#allocation7 + $0x30] sm:$0xff] %v194_v35  ;;  %447 = vst [vmem:[#allocation7 + $0x160] sm:$0xff] %v308_v36  ;;  %v196_v37 = vpop.f32.mrb[7].mxu0  ;;  %v310_v38 = vpop.f32.mrb[7].mxu1 }
 0x12b   :  { %410 = vst [vmem:[#allocation7 + $0x38] sm:$0xff] %v196_v37  ;;  %448 = vst [vmem:[#allocation7 + $0x168] sm:$0xff] %v310_v38 }
 0x12d   :  { %v200_v39 = vpop.f32.mrb[8].mxu0  ;;  %v314_v40 = vpop.f32.mrb[8].mxu1 }
 0x12e   :  { %411 = vst [vmem:[#allocation7 + $0x40] sm:$0xff] %v200_v39  ;;  %449 = vst [vmem:[#allocation7 + $0x170] sm:$0xff] %v314_v40  ;;  %v202_v41 = vpop.f32.mrb[9].mxu0  ;;  %v316_v42 = vpop.f32.mrb[9].mxu1 }
 0x12f   :  { %412 = vst [vmem:[#allocation7 + $0x48] sm:$0xff] %v202_v41  ;;  %450 = vst [vmem:[#allocation7 + $0x178] sm:$0xff] %v316_v42 }
 0x131   :  { %v206_v43 = vpop.f32.mrb[10].mxu0  ;;  %v320_v44 = vpop.f32.mrb[10].mxu1 }
 0x132   :  { %413 = vst [vmem:[#allocation7 + $0x50] sm:$0xff] %v206_v43  ;;  %451 = vst [vmem:[#allocation7 + $0x180] sm:$0xff] %v320_v44  ;;  %v208_v45 = vpop.f32.mrb[11].mxu0  ;;  %v322_v46 = vpop.f32.mrb[11].mxu1 }
 0x133   :  { %414 = vst [vmem:[#allocation7 + $0x58] sm:$0xff] %v208_v45  ;;  %452 = vst [vmem:[#allocation7 + $0x188] sm:$0xff] %v322_v46 }
 0x135   :  { %v212_v47 = vpop.f32.mrb[12].mxu0  ;;  %v326_v48 = vpop.f32.mrb[12].mxu1 }
 0x136   :  { %415 = vst [vmem:[#allocation7 + $0x60] sm:$0xff] %v212_v47  ;;  %453 = vst [vmem:[#allocation7 + $0x190] sm:$0xff] %v326_v48  ;;  %v214_v49 = vpop.f32.mrb[13].mxu0  ;;  %v328_v50 = vpop.f32.mrb[13].mxu1 }
 0x137   :  { %416 = vst [vmem:[#allocation7 + $0x68] sm:$0xff] %v214_v49  ;;  %454 = vst [vmem:[#allocation7 + $0x198] sm:$0xff] %v328_v50 }
 0x139   :  { %v218_v51 = vpop.f32.mrb[14].mxu0  ;;  %v332_v52 = vpop.f32.mrb[14].mxu1 }
 0x13a   :  { %417 = vst [vmem:[#allocation7 + $0x70] sm:$0xff] %v218_v51  ;;  %455 = vst [vmem:[#allocation7 + $0x1a0] sm:$0xff] %v332_v52  ;;  %v220_v53 = vpop.f32.mrb[15].mxu0  ;;  %v334_v54 = vpop.f32.mrb[15].mxu1 }
 0x13b   :  { %418 = vst [vmem:[#allocation7 + $0x78] sm:$0xff] %v220_v53  ;;  %456 = vst [vmem:[#allocation7 + $0x1a8] sm:$0xff] %v334_v54 }
 0x13d   :  { %v224_v55 = vpop.f32.mrb[16].mxu0  ;;  %v338_v56 = vpop.f32.mrb[16].mxu1 }
 0x13e   :  { %419 = vst [vmem:[#allocation7 + $0x80] sm:$0xff] %v224_v55  ;;  %457 = vst [vmem:[#allocation7 + $0x1b0] sm:$0xff] %v338_v56  ;;  %v226_v57 = vpop.f32.mrb[17].mxu0  ;;  %v340_v58 = vpop.f32.mrb[17].mxu1 }
 0x13f   :  { %420 = vst [vmem:[#allocation7 + $0x88] sm:$0xff] %v226_v57  ;;  %458 = vst [vmem:[#allocation7 + $0x1b8] sm:$0xff] %v340_v58 }
 0x141   :  { %v230_v59 = vpop.f32.mrb[18].mxu0  ;;  %v344_v60 = vpop.f32.mrb[18].mxu1 }
 0x142   :  { %421 = vst [vmem:[#allocation7 + $0x90] sm:$0xff] %v230_v59  ;;  %459 = vst [vmem:[#allocation7 + $0x1c0] sm:$0xff] %v344_v60  ;;  %v232_v61 = vpop.f32.mrb[19].mxu0  ;;  %v346_v62 = vpop.f32.mrb[19].mxu1 }
 0x143   :  { %422 = vst [vmem:[#allocation7 + $0x98] sm:$0xff] %v232_v61  ;;  %460 = vst [vmem:[#allocation7 + $0x1c8] sm:$0xff] %v346_v62 }
 0x145   :  { %v236_v63 = vpop.f32.mrb[20].mxu0  ;;  %v350_v1 = vpop.f32.mrb[20].mxu1 }
 0x146   :  { %423 = vst [vmem:[#allocation7 + $0xa0] sm:$0xff] %v236_v63  ;;  %461 = vst [vmem:[#allocation7 + $0x1d0] sm:$0xff] %v350_v1  ;;  %v238_v2 = vpop.f32.mrb[21].mxu0  ;;  %v352_v3 = vpop.f32.mrb[21].mxu1 }
 0x147   :  { %424 = vst [vmem:[#allocation7 + $0xa8] sm:$0xff] %v238_v2  ;;  %462 = vst [vmem:[#allocation7 + $0x1d8] sm:$0xff] %v352_v3 }
 0x149   :  { %v242_v4 = vpop.f32.mrb[22].mxu0  ;;  %v356_v5 = vpop.f32.mrb[22].mxu1 }
 0x14a   :  { %425 = vst [vmem:[#allocation7 + $0xb0] sm:$0xff] %v242_v4  ;;  %463 = vst [vmem:[#allocation7 + $0x1e0] sm:$0xff] %v356_v5  ;;  %v244_v6 = vpop.f32.mrb[23].mxu0  ;;  %v358_v7 = vpop.f32.mrb[23].mxu1 }
 0x14b   :  { %426 = vst [vmem:[#allocation7 + $0xb8] sm:$0xff] %v244_v6  ;;  %464 = vst [vmem:[#allocation7 + $0x1e8] sm:$0xff] %v358_v7 }
 0x14d   :  { %v248_v8 = vpop.f32.mrb[24].mxu0  ;;  %v362_v9 = vpop.f32.mrb[24].mxu1 }
 0x14e   :  { %427 = vst [vmem:[#allocation7 + $0xc0] sm:$0xff] %v248_v8  ;;  %465 = vst [vmem:[#allocation7 + $0x1f0] sm:$0xff] %v362_v9  ;;  %v250_v10 = vpop.f32.mrb[25].mxu0  ;;  %v364_v11 = vpop.f32.mrb[25].mxu1 }
 0x14f   :  { %428 = vst [vmem:[#allocation7 + $0xc8] sm:$0xff] %v250_v10  ;;  %466 = vst [vmem:[#allocation7 + $0x1f8] sm:$0xff] %v364_v11 }
 0x151   :  { %v254_v12 = vpop.f32.mrb[26].mxu0  ;;  %v368_v13 = vpop.f32.mrb[26].mxu1 }
 0x152   :  { %429 = vst [vmem:[#allocation7 + $0xd0] sm:$0xff] %v254_v12  ;;  %467 = vst [vmem:[#allocation7 + $0x200] sm:$0xff] %v368_v13  ;;  %v256_v14 = vpop.f32.mrb[27].mxu0  ;;  %v370_v15 = vpop.f32.mrb[27].mxu1 }
 0x153   :  { %430 = vst [vmem:[#allocation7 + $0xd8] sm:$0xff] %v256_v14  ;;  %468 = vst [vmem:[#allocation7 + $0x208] sm:$0xff] %v370_v15 }
 0x155   :  { %v260_v16 = vpop.f32.mrb[28].mxu0  ;;  %v374_v17 = vpop.f32.mrb[28].mxu1 }
 0x156   :  { %431 = vst [vmem:[#allocation7 + $0xe0] sm:$0xff] %v260_v16  ;;  %469 = vst [vmem:[#allocation7 + $0x210] sm:$0xff] %v374_v17  ;;  %v262_v18 = vpop.f32.mrb[29].mxu0  ;;  %v376_v19 = vpop.f32.mrb[29].mxu1 }
 0x157   :  { %432 = vst [vmem:[#allocation7 + $0xe8] sm:$0xff] %v262_v18  ;;  %470 = vst [vmem:[#allocation7 + $0x218] sm:$0xff] %v376_v19 }
 0x159   :  { %v266_v20 = vpop.f32.mrb[30].mxu0  ;;  %v380_v21 = vpop.f32.mrb[30].mxu1 }
 0x15a   :  { %433 = vst [vmem:[#allocation7 + $0xf0] sm:$0xff] %v266_v20  ;;  %471 = vst [vmem:[#allocation7 + $0x220] sm:$0xff] %v380_v21  ;;  %v268_v22 = vpop.f32.mrb[31].mxu0  ;;  %v382_v23 = vpop.f32.mrb[31].mxu1 }
 0x15b   :  { %434 = vst [vmem:[#allocation7 + $0xf8] sm:$0xff] %v268_v22  ;;  %472 = vst [vmem:[#allocation7 + $0x228] sm:$0xff] %v382_v23 }
 0x15d   :  { %v272_v24 = vpop.f32.mrb[32].mxu0  ;;  %v386_v25 = vpop.f32.mrb[32].mxu1 }
 0x15e   :  { %435 = vst [vmem:[#allocation7 + $0x100] sm:$0xff] %v272_v24  ;;  %473 = vst [vmem:[#allocation7 + $0x230] sm:$0xff] %v386_v25  ;;  %v274_v26 = vpop.f32.mrb[33].mxu0  ;;  %v388_v27 = vpop.f32.mrb[33].mxu1 }
 0x15f   :  { %436 = vst [vmem:[#allocation7 + $0x108] sm:$0xff] %v274_v26  ;;  %474 = vst [vmem:[#allocation7 + $0x238] sm:$0xff] %v388_v27 }
 0x161   :  { %v278_v28 = vpop.f32.mrb[34].mxu0  ;;  %v392_v29 = vpop.f32.mrb[34].mxu1 }
 0x162   :  { %437 = vst [vmem:[#allocation7 + $0x110] sm:$0xff] %v278_v28  ;;  %475 = vst [vmem:[#allocation7 + $0x240] sm:$0xff] %v392_v29  ;;  %v280_v30 = vpop.f32.mrb[35].mxu0  ;;  %v394_v31 = vpop.f32.mrb[35].mxu1 }
 0x163   :  { %438 = vst [vmem:[#allocation7 + $0x118] sm:$0xff] %v280_v30  ;;  %476 = vst [vmem:[#allocation7 + $0x248] sm:$0xff] %v394_v31 }
 0x165   :  { %v284_v0 = vpop.f32.mrb[36].mxu0  ;;  %v398_v32 = vpop.f32.mrb[36].mxu1 }
 0x166   :  { %439 = vst [vmem:[#allocation7 + $0x120] sm:$0xff] %v284_v0  ;;  %477 = vst [vmem:[#allocation7 + $0x250] sm:$0xff] %v398_v32  ;;  %v286_v33 = vpop.f32.mrb[37].mxu0  ;;  %v400_v34 = vpop.f32.mrb[37].mxu1 }
 0x167   :  { %440 = vst [vmem:[#allocation7 + $0x128] sm:$0xff] %v286_v33  ;;  %478 = vst [vmem:[#allocation7 + $0x258] sm:$0xff] %v400_v34 }
 0x168   :  { %608 = shalt.err (!%p605_p6)
}
 0x169   :  { %s609_s12 = scalar_lea.hbm %s730_s2, 9728 }
 0x16a   :  { %p610_p7 = scmp.ne.s32.totalorder %s730_s2, %s609_s12  ;;  %p613_p8 = scmp.lt.u32.totalorder %s609_s12, %s730_s2 }
 0x16c   :  { %p615_p9 = pnand %p613_p8, %p610_p7 }
 0x16e   :  { %618 = shalt.err (!%p615_p9)
}
 0x16f   :  { %490 = dma.vmem_to_hbm [thread:$0]  %s485_s8, 9728, %s730_s2, [#allocation4], %s629_s0, %s629_s0, %s630_s5  }
 0x170   :  { %623 = dma.done.wait [#allocation4], 9728  }
 0x171   :  { %624 = vsyncadd [#allocation4], 4294957568 }
 0x172   :  { %494 = vsyncpa [#allocation3], 1 }
 0x173   :  { %495 = vsyncpa [#allocation6], 1 }
 0x174   :  { %496 = vsyncpa [#allocation4], 1 }

</bundles_post_ra>
